<compile_context>
chip_gen: v7x
topology: tpu7x:2x2x1
jax: 0.10.0
libtpu: 0.0.40
codegen_flags: <defaults>
</compile_context>

<pallas_src>
import math
import jax
import jax.numpy as jnp
from jax.experimental import pallas as pl
from jax.experimental.pallas import tpu as pltpu


def _round_up(n, m):
    return ((n + m - 1) // m) * m


def _mlp_kernel(scal_ref, x_ref, w1a_ref, w1b_ref, b1_ref, w2c_ref, o_ref):
    # scal_ref (SMEM, f32[3]): [exp(-A), B*C, b2*C]
    # x_ref:   (3, TN)  rows = distance, cosine_a, cosine_b   (lane-dense)
    # w1a_ref: (H, 1)   fc1 weight column for cosine_a
    # w1b_ref: (H, 1)   fc1 weight column for cosine_b
    # b1_ref:  (H, 1)
    # w2c_ref: (H, 1)   fc2 weight column pre-scaled by C
    # o_ref:   (1, TN)
    x = x_ref[...]                        # (3, TN)
    d = x[0:1, :]                         # (1, TN) distance
    ca = x[1:2, :]                        # (1, TN) cosine_a
    cb = x[2:3, :]                        # (1, TN) cosine_b

    # First linear layer: two broadcast FMAs on the VPU -> (H, TN)
    h = w1a_ref[...] * ca + w1b_ref[...] * cb + b1_ref[...]

    # Softplus (PyTorch default beta=1, threshold=20): linear above threshold.
    # No inner clamp needed: exp overflow -> inf -> log1p -> inf is discarded
    # by the select, never producing NaN.
    sp = jnp.where(h > 20.0, h, jnp.log1p(jnp.exp(h)))

    # Second linear layer (output width 1), C folded into the weights/bias:
    m = jnp.sum(sp * w2c_ref[...], axis=0, keepdims=True) + scal_ref[2]  # (1,TN)

    denom = scal_ref[0] + d * d
    o_ref[...] = m / denom + scal_ref[1]


def mlp_forward(x, w1, b1, w2, b2, A, B, C, *, tile_n=16384, min_grid_steps=8):
    """Forward pass of the MLP module.

    x: (N, 3) f32 with columns [distance, cosine_a, cosine_b]  (PyTorch layout),
       or (3, N) f32 SoA layout (fast path, no wrapper transpose).
    Returns (N,) f32.
    """
    x = jnp.asarray(x, jnp.float32)
    if x.ndim != 2:
        raise ValueError("x must be 2-D")
    if x.shape[0] == 3 and x.shape[1] != 3:
        x_t = x                     # already SoA (3, N): no extra HBM pass
        N = x.shape[1]
    else:
        N = x.shape[0]
        x_t = x.T                   # (N, 3) -> (3, N) compatibility path

    H = w1.shape[0]                 # w1 is PyTorch-layout (H, in=2)

    # Lane-dense tiling: multiple of 128, large enough to amortize per-step
    # overhead, small enough to keep >= a few grid steps (v7x megacore), but
    # never below 512 columns for small N.
    n_pad128 = _round_up(N, 128)
    tn = _round_up(max(int(tile_n), 128), 128)
    balanced = max(512, _round_up(pl.cdiv(N, max(int(min_grid_steps), 1)), 128))
    tn = min(tn, balanced, n_pad128)
    n_pad = _round_up(N, tn)
    grid = (n_pad // tn,)

    if n_pad != N:
        # Pad with 1.0 so padded distance keeps the denominator finite.
        x_t = jnp.pad(x_t, ((0, 0), (0, n_pad - N)), constant_values=1.0)

    A_f = jnp.asarray(A, jnp.float32)
    B_f = jnp.asarray(B, jnp.float32)
    C_f = jnp.asarray(C, jnp.float32)
    b2_f = jnp.asarray(b2, jnp.float32)

    w1_f = jnp.asarray(w1, jnp.float32)                     # (H, 2)
    w1a = w1_f[:, 0:1]                                      # (H, 1)
    w1b = w1_f[:, 1:2]                                      # (H, 1)
    b1_c = jnp.asarray(b1, jnp.float32).reshape(H, 1)       # (H, 1)
    w2_c = (jnp.asarray(w2, jnp.float32) * C_f).reshape(H, 1)  # (H, 1), C folded
    scalars = jnp.stack([
        jnp.exp(-A_f).reshape(()),
        (B_f * C_f).reshape(()),
        (b2_f * C_f).reshape(()),
    ]).reshape(3)

    cost = pl.CostEstimate(
        flops=int(8 * H * n_pad),
        transcendentals=int(2 * H * n_pad),
        bytes_accessed=int(16 * n_pad),
    )

    out = pl.pallas_call(
        _mlp_kernel,
        out_shape=jax.ShapeDtypeStruct((1, n_pad), jnp.float32),
        grid_spec=pltpu.PrefetchScalarGridSpec(
            num_scalar_prefetch=0,
            grid=grid,
            in_specs=[
                pl.BlockSpec(memory_space=pltpu.MemorySpace.SMEM),  # scalars
                pl.BlockSpec((3, tn), lambda i: (0, i)),            # x^T block
                pl.BlockSpec((H, 1), lambda i: (0, 0)),             # W1 col a
                pl.BlockSpec((H, 1), lambda i: (0, 0)),             # W1 col b
                pl.BlockSpec((H, 1), lambda i: (0, 0)),             # b1
                pl.BlockSpec((H, 1), lambda i: (0, 0)),             # W2*C column
            ],
            out_specs=pl.BlockSpec((1, tn), lambda i: (0, i)),
        ),
        compiler_params=pltpu.CompilerParams(
            dimension_semantics=("parallel",),
            vmem_limit_bytes=64 * 1024 * 1024,
        ),
        cost_estimate=cost,
    )(scalars, x_t, w1a, w1b, b1_c, w2_c)

    return out[0, :N]   # (N,)


def _reference(x, w1, b1, w2, b2, A, B, C):
    distance = x[:, 0]
    xc = x[:, 1:3]
    h = xc @ w1.T + b1
    h = jnp.where(h > 20.0, h, jnp.log1p(jnp.exp(jnp.minimum(h, 20.0))))
    m = (h @ w2.T + b2)[:, 0]
    return (m / (jnp.exp(-A) + distance ** 2) + B) * C


if __name__ == "__main__":
    key = jax.random.PRNGKey(0)
    k_x, k_w1, k_b1, k_w2, k_b2, k_abc, k_x2 = jax.random.split(key, 7)

    IN, H, OUT = 2, 64, 1

    # Deterministic parameter init mirroring nn.Linear defaults (uniform +-1/sqrt(fan_in)).
    bound1 = 1.0 / math.sqrt(IN)
    w1 = jax.random.uniform(k_w1, (H, IN), jnp.float32, -bound1, bound1)
    b1 = jax.random.uniform(k_b1, (H,), jnp.float32, -bound1, bound1)
    bound2 = 1.0 / math.sqrt(H)
    w2 = jax.random.uniform(k_w2, (OUT, H), jnp.float32, -bound2, bound2)
    b2 = jax.random.uniform(k_b2, (), jnp.float32, -bound2, bound2)
    A, B, C = jax.random.normal(k_abc, (3,), jnp.float32)

    # Test 1: small N, not a multiple of 128 (exercises padding), single tile.
    N1 = 300
    x1 = jax.random.normal(k_x, (N1, 3), jnp.float32)
    out1 = mlp_forward(x1, w1, b1, w2, b2, A, B, C)
    jax.block_until_ready(out1)
    ref1 = _reference(x1, w1, b1, w2, b2, A, B, C)
    assert out1.shape == (N1,)
    assert jnp.allclose(out1, ref1, rtol=1e-4, atol=1e-4), (out1, ref1)

    # Test 2: multi-tile grid (tile_n=128 -> 8 grid steps after padding).
    N2 = 1000
    x2 = jax.random.normal(k_x2, (N2, 3), jnp.float32)
    out2 = mlp_forward(x2, w1, b1, w2, b2, A, B, C, tile_n=128)
    jax.block_until_ready(out2)
    ref2 = _reference(x2, w1, b1, w2, b2, A, B, C)
    assert out2.shape == (N2,)
    assert jnp.allclose(out2, ref2, rtol=1e-4, atol=1e-4), (out2, ref2)

    # Test 3: SoA (3, N) fast path (no wrapper-side transpose) matches the AoS path.
    out3 = mlp_forward(x2.T, w1, b1, w2, b2, A, B, C)
    jax.block_until_ready(out3)
    assert out3.shape == (N2,)
    assert jnp.allclose(out3, ref2, rtol=1e-4, atol=1e-4), (out3, ref2)

    print("KERNEL_OK")
</pallas_src>

<mosaic_0001>
module attributes {stable_mosaic.version = 11 : i64} {
  func.func @_mlp_kernel(%arg0: i32, %arg1: memref<3xf32, #tpu.memory_space<smem>>, %arg2: memref<3x384xf32, #tpu.memory_space<vmem>>, %arg3: memref<64x1xf32, #tpu.memory_space<vmem>>, %arg4: memref<64x1xf32, #tpu.memory_space<vmem>>, %arg5: memref<64x1xf32, #tpu.memory_space<vmem>>, %arg6: memref<64x1xf32, #tpu.memory_space<vmem>>, %arg7: memref<1x384xf32, #tpu.memory_space<vmem>>) attributes {dimension_semantics = [#tpu.dimension_semantics<parallel>], iteration_bounds = array<i64: 1>, scalar_prefetch = 0 : i64, scratch_operands = 0 : i64, tpu.core_type = #tpu.core_type<tc>, window_params = [{transform_indices = @transform_0, window_bounds = array<i64: 3>}, {transform_indices = @transform_1, window_bounds = array<i64: 3, 384>}, {pipeline_mode = #tpu.pipeline_mode<synchronous>, transform_indices = @transform_2, window_bounds = array<i64: 64, 1>}, {pipeline_mode = #tpu.pipeline_mode<synchronous>, transform_indices = @transform_3, window_bounds = array<i64: 64, 1>}, {pipeline_mode = #tpu.pipeline_mode<synchronous>, transform_indices = @transform_4, window_bounds = array<i64: 64, 1>}, {pipeline_mode = #tpu.pipeline_mode<synchronous>, transform_indices = @transform_5, window_bounds = array<i64: 64, 1>}, {transform_indices = @transform_6, window_bounds = array<i64: 1, 384>}]} {
    %c0 = arith.constant 0 : index
    %c0_0 = arith.constant 0 : index
    %0 = vector.load %arg2[%c0, %c0_0] : memref<3x384xf32, #tpu.memory_space<vmem>>, vector<3x384xf32>
    %1 = vector.extract_strided_slice %0 {offsets = [0, 0], sizes = [1, 384], strides = [1, 1]} : vector<3x384xf32> to vector<1x384xf32>
    %2 = vector.extract_strided_slice %0 {offsets = [1, 0], sizes = [1, 384], strides = [1, 1]} : vector<3x384xf32> to vector<1x384xf32>
    %3 = vector.extract_strided_slice %0 {offsets = [2, 0], sizes = [1, 384], strides = [1, 1]} : vector<3x384xf32> to vector<1x384xf32>
    %c0_1 = arith.constant 0 : index
    %c0_2 = arith.constant 0 : index
    %4 = vector.load %arg3[%c0_1, %c0_2] : memref<64x1xf32, #tpu.memory_space<vmem>>, vector<64x1xf32>
    %5 = vector.broadcast %4 : vector<64x1xf32> to vector<64x384xf32>
    %6 = vector.broadcast %2 : vector<1x384xf32> to vector<64x384xf32>
    %7 = arith.mulf %5, %6 : vector<64x384xf32>
    %c0_3 = arith.constant 0 : index
    %c0_4 = arith.constant 0 : index
    %8 = vector.load %arg4[%c0_3, %c0_4] : memref<64x1xf32, #tpu.memory_space<vmem>>, vector<64x1xf32>
    %9 = vector.broadcast %8 : vector<64x1xf32> to vector<64x384xf32>
    %10 = vector.broadcast %3 : vector<1x384xf32> to vector<64x384xf32>
    %11 = arith.mulf %9, %10 : vector<64x384xf32>
    %12 = arith.addf %7, %11 : vector<64x384xf32>
    %c0_5 = arith.constant 0 : index
    %c0_6 = arith.constant 0 : index
    %13 = vector.load %arg5[%c0_5, %c0_6] : memref<64x1xf32, #tpu.memory_space<vmem>>, vector<64x1xf32>
    %14 = vector.broadcast %13 : vector<64x1xf32> to vector<64x384xf32>
    %15 = arith.addf %12, %14 : vector<64x384xf32>
    %cst = arith.constant 2.000000e+01 : f32
    %16 = vector.broadcast %cst : f32 to vector<64x384xf32>
    %17 = arith.cmpf ogt, %15, %16 : vector<64x384xf32>
    %18 = math.exp %15 : vector<64x384xf32>
    %19 = math.log1p %18 : vector<64x384xf32>
    %20 = arith.select %17, %15, %19 : vector<64x384xi1>, vector<64x384xf32>
    %c0_7 = arith.constant 0 : index
    %c0_8 = arith.constant 0 : index
    %21 = vector.load %arg6[%c0_7, %c0_8] : memref<64x1xf32, #tpu.memory_space<vmem>>, vector<64x1xf32>
    %22 = vector.broadcast %21 : vector<64x1xf32> to vector<64x384xf32>
    %23 = arith.mulf %20, %22 : vector<64x384xf32>
    %cst_9 = arith.constant dense<0.000000e+00> : vector<384xf32>
    %24 = vector.multi_reduction <add>, %23, %cst_9 [0] : vector<64x384xf32> to vector<384xf32>
    %25 = vector.shape_cast %24 : vector<384xf32> to vector<1x384xf32>
    %c2 = arith.constant 2 : index
    %26 = memref.load %arg1[%c2] : memref<3xf32, #tpu.memory_space<smem>>
    %27 = vector.broadcast %26 : f32 to vector<1x384xf32>
    %28 = arith.addf %25, %27 : vector<1x384xf32>
    %c0_10 = arith.constant 0 : index
    %29 = memref.load %arg1[%c0_10] : memref<3xf32, #tpu.memory_space<smem>>
    %30 = arith.mulf %1, %1 : vector<1x384xf32>
    %31 = vector.broadcast %29 : f32 to vector<1x384xf32>
    %32 = arith.addf %31, %30 : vector<1x384xf32>
    %33 = arith.divf %28, %32 : vector<1x384xf32>
    %c1 = arith.constant 1 : index
    %34 = memref.load %arg1[%c1] : memref<3xf32, #tpu.memory_space<smem>>
    %35 = vector.broadcast %34 : f32 to vector<1x384xf32>
    %36 = arith.addf %33, %35 : vector<1x384xf32>
    %c0_11 = arith.constant 0 : index
    %c0_12 = arith.constant 0 : index
    %37 = vector.load %arg7[%c0_11, %c0_12] : memref<1x384xf32, #tpu.memory_space<vmem>>, vector<1x384xf32>
    tpu.vector_store %arg7[%c0_11, %c0_12], %36 {strides = array<i32>} : memref<1x384xf32, #tpu.memory_space<vmem>>, vector<1x384xf32>,
    return
  }
  func.func @transform_0(%arg0: i32) -> i32 {
    %c0_i32 = arith.constant 0 : i32
    %c0_i32_0 = arith.constant 0 : i32
    return %c0_i32 : i32
  }
  func.func @transform_1(%arg0: i32) -> (i32, i32) {
    %c0_i32 = arith.constant 0 : i32
    %c0_i32_0 = arith.constant 0 : i32
    return %c0_i32, %arg0 : i32, i32
  }
  func.func @transform_2(%arg0: i32) -> (i32, i32) {
    %c0_i32 = arith.constant 0 : i32
    %c0_i32_0 = arith.constant 0 : i32
    %c0_i32_1 = arith.constant 0 : i32
    return %c0_i32, %c0_i32_0 : i32, i32
  }
  func.func @transform_3(%arg0: i32) -> (i32, i32) {
    %c0_i32 = arith.constant 0 : i32
    %c0_i32_0 = arith.constant 0 : i32
    %c0_i32_1 = arith.constant 0 : i32
    return %c0_i32, %c0_i32_0 : i32, i32
  }
  func.func @transform_4(%arg0: i32) -> (i32, i32) {
    %c0_i32 = arith.constant 0 : i32
    %c0_i32_0 = arith.constant 0 : i32
    %c0_i32_1 = arith.constant 0 : i32
    return %c0_i32, %c0_i32_0 : i32, i32
  }
  func.func @transform_5(%arg0: i32) -> (i32, i32) {
    %c0_i32 = arith.constant 0 : i32
    %c0_i32_0 = arith.constant 0 : i32
    %c0_i32_1 = arith.constant 0 : i32
    return %c0_i32, %c0_i32_0 : i32, i32
  }
  func.func @transform_6(%arg0: i32) -> (i32, i32) {
    %c0_i32 = arith.constant 0 : i32
    %c0_i32_0 = arith.constant 0 : i32
    return %c0_i32, %arg0 : i32, i32
  }
}

</mosaic_0001>

<bundles_post_ra>
// kernel: tpu_custom_call.1
= control target key start
LH: loop header
LB: loop body
LE: loop exit
PB: predicated region body
PF: predicated region fallthrough
CT: control target
= control target key end

     0   :  { %11 = vsyncpa [#allocation5], 0  ;;  %s1929_s0 = inlined_call_operand.hbm [shape: f32[3], index: 0, kind: input, shape index: {}]   ;;  %s1930_s1 = inlined_call_operand.hbm [shape: f32[3,384], index: 1, kind: input, shape index: {}]   ;;  %s1931_s2 = inlined_call_operand.hbm [shape: f32[64,1], index: 2, kind: input, shape index: {}]   ;;  %s1932_s3 = inlined_call_operand.hbm [shape: f32[64,1], index: 3, kind: input, shape index: {}]   ;;  %s1933_s4 = inlined_call_operand.hbm [shape: f32[64,1], index: 4, kind: input, shape index: {}]   ;;  %s1934_s5 = inlined_call_operand.hbm [shape: f32[64,1], index: 5, kind: input, shape index: {}]   ;;  %s1935_s6 = inlined_call_operand.hbm [shape: f32[1,384], index: 6, kind: output, shape index: {}]  }
   0x1   :  { %12 = vsyncpa [#allocation3], 0 }
   0x2   :  { %13 = vsyncpa [#allocation8], 0 }
   0x3   :  { %14 = vsyncpa [#allocation11], 0 }
   0x4   :  { %15 = vsyncpa [#allocation4], 0  ;;  %s1180_s21 = smov [#allocation7]   ;;  %s1028_s25 = scalar_lea.hbm %s1931_s2, 1024 }
   0x5   :  { %s39_s22 = sshll.u32 %s1180_s21, 4  ;;  %p1029_p0 = scmp.ne.s32.totalorder %s1931_s2, %s1028_s25  ;;  %s40_s22 = int_to_ptr.vmem [resolvable:$true] %s39_s22 }
   0x6   :  { %p1032_p1 = scmp.lt.u32.totalorder %s1028_s25, %s1931_s2 }
   0x8   :  { %p1034_p2 = pnand %p1032_p1, %p1029_p0 }
   0xa   :  { %1037 = shalt.err (!%p1034_p2)
}
   0xb   :  { %s1038_s30 = scalar_lea.vmem %s40_s22, 1024  ;;  %p1043_p4 = scmp.lt.s32.totalorder %s40_s22, %s40_s22 }
   0xc   :  { %p1039_p3 = scmp.ne.s32.totalorder %s40_s22, %s1038_s30  ;;  %p1044_p5 = scmp.lt.s32.totalorder %s1038_s30, %s1038_s30 }
   0xe   :  { %p1045_p6 = por %p1044_p5, %p1043_p4 }
  0x10   :  { %p1046_p7 = pnand %p1045_p6, %p1039_p3 }
  0x12   :  { %1049 = shalt.err (!%p1046_p7)
}
  0x13   :  { %s1181_s7 = smov 128   ;;  %s1182_s8 = smov 8  }
  0x14   :  { %45 = dma.hbm_to_vmem [thread:$0]  %s1931_s2, 1024, %s40_s22, [#allocation8], %s1181_s7, %s1181_s7, %s1182_s8  }
  0x15   :  { %s1183_s11 = smov [#allocation10]   ;;  %s1050_s15 = scalar_lea.hbm %s1933_s4, 1024 }
  0x16   :  { %s63_s12 = sshll.u32 %s1183_s11, 4  ;;  %p1051_p8 = scmp.ne.s32.totalorder %s1933_s4, %s1050_s15  ;;  %s64_s12 = int_to_ptr.vmem [resolvable:$true] %s63_s12 }
  0x17   :  { %p1054_p9 = scmp.lt.u32.totalorder %s1050_s15, %s1933_s4 }
  0x19   :  { %p1056_p10 = pnand %p1054_p9, %p1051_p8 }
  0x1b   :  { %1059 = shalt.err (!%p1056_p10)
}
  0x1c   :  { %s1060_s20 = scalar_lea.vmem %s64_s12, 1024  ;;  %p1065_p12 = scmp.lt.s32.totalorder %s64_s12, %s64_s12 }
  0x1d   :  { %p1061_p11 = scmp.ne.s32.totalorder %s64_s12, %s1060_s20  ;;  %p1066_p13 = scmp.lt.s32.totalorder %s1060_s20, %s1060_s20 }
  0x1f   :  { %p1067_p0 = por %p1066_p13, %p1065_p12 }
  0x21   :  { %p1068_p1 = pnand %p1067_p0, %p1061_p11 }
  0x23   :  { %1071 = shalt.err (!%p1068_p1)
}
  0x24   :  { %69 = dma.hbm_to_vmem [thread:$0]  %s1933_s4, 1024, %s64_s12, [#allocation11], %s1181_s7, %s1181_s7, %s1182_s8  }
  0x25   :  { %s1072_s24 = scalar_lea.hbm %s1929_s0, 16 }
  0x26   :  { %p1073_p2 = scmp.ne.s32.totalorder %s1929_s0, %s1072_s24  ;;  %p1076_p3 = scmp.lt.u32.totalorder %s1072_s24, %s1929_s0 }
  0x28   :  { %p1078_p4 = pnand %p1076_p3, %p1073_p2 }
  0x2a   :  { %1081 = shalt.err (!%p1078_p4)
}
  0x2b   :  { %s1184_s29 = smov [#allocation2]   ;;  %s1185_s4 = smov [#allocation6]  }
  0x2c   :  { %23 = dma.hbm_to_smem %s1929_s0, 16, %s1184_s29, [#allocation5]  }
  0x2d   :  { %s30_s10 = sshll.u32 %s1185_s4, 4  ;;  %s1186_s11 = smov [#allocation9]   ;;  %s31_s10 = int_to_ptr.vmem [resolvable:$true] %s30_s10 }
  0x2e   :  { %s51_s12 = sshll.u32 %s1186_s11, 4  ;;  %s1082_s15 = scalar_lea.hbm %s1930_s1, 192  ;;  %s52_s12 = int_to_ptr.vmem [resolvable:$true] %s51_s12 }
  0x2f   :  { %p1083_p5 = scmp.ne.s32.totalorder %s1930_s1, %s1082_s15  ;;  %p1086_p6 = scmp.lt.u32.totalorder %s1082_s15, %s1930_s1 }
  0x31   :  { %p1088_p7 = pnand %p1086_p6, %p1083_p5 }
  0x33   :  { %1091 = shalt.err (!%p1088_p7)
}
  0x34   :  { %s1092_s0 = scalar_lea.vmem %s31_s10, 192  ;;  %p1097_p9 = scmp.lt.s32.totalorder %s31_s10, %s31_s10 }
  0x35   :  { %p1093_p8 = scmp.ne.s32.totalorder %s31_s10, %s1092_s0  ;;  %p1098_p10 = scmp.lt.s32.totalorder %s1092_s0, %s1092_s0 }
  0x37   :  { %p1099_p11 = por %p1098_p10, %p1097_p9 }
  0x39   :  { %p1100_p12 = pnand %p1099_p11, %p1093_p8 }
  0x3b   :  { %1103 = shalt.err (!%p1100_p12)
}
  0x3c   :  { %33 = dma.hbm_to_vmem [thread:$0]  %s1930_s1, 192, %s31_s10, [#allocation3]  }
  0x3d   :  { %s1104_s23 = scalar_lea.hbm %s1932_s3, 1024 }
  0x3e   :  { %p1105_p13 = scmp.ne.s32.totalorder %s1932_s3, %s1104_s23  ;;  %p1108_p0 = scmp.lt.u32.totalorder %s1104_s23, %s1932_s3 }
  0x40   :  { %p1110_p1 = pnand %p1108_p0, %p1105_p13 }
  0x42   :  { %1113 = shalt.err (!%p1110_p1)
}
  0x43   :  { %s1114_s28 = scalar_lea.vmem %s52_s12, 1024  ;;  %p1119_p3 = scmp.lt.s32.totalorder %s52_s12, %s52_s12 }
  0x44   :  { %p1115_p2 = scmp.ne.s32.totalorder %s52_s12, %s1114_s28  ;;  %p1120_p4 = scmp.lt.s32.totalorder %s1114_s28, %s1114_s28 }
  0x46   :  { %p1121_p5 = por %p1120_p4, %p1119_p3 }
  0x48   :  { %p1122_p6 = pnand %p1121_p5, %p1115_p2 }
  0x4a   :  { %1125 = shalt.err (!%p1122_p6)
}
  0x4b   :  { %57 = dma.hbm_to_vmem [thread:$0]  %s1932_s3, 1024, %s52_s12, [#allocation8], %s1181_s7, %s1181_s7, %s1182_s8  }
  0x4c   :  { %s1187_s30 = smov [#allocation12]   ;;  %s1126_s11 = scalar_lea.hbm %s1934_s5, 1024 }
  0x4d   :  { %s75_s9 = sshll.u32 %s1187_s30, 4  ;;  %p1127_p7 = scmp.ne.s32.totalorder %s1934_s5, %s1126_s11  ;;  %s76_s9 = int_to_ptr.vmem [resolvable:$true] %s75_s9 }
  0x4e   :  { %p1130_p8 = scmp.lt.u32.totalorder %s1126_s11, %s1934_s5 }
  0x50   :  { %p1132_p9 = pnand %p1130_p8, %p1127_p7 }
  0x52   :  { %1135 = shalt.err (!%p1132_p9)
}
  0x53   :  { %s1136_s17 = scalar_lea.vmem %s76_s9, 1024  ;;  %p1141_p11 = scmp.lt.s32.totalorder %s76_s9, %s76_s9 }
  0x54   :  { %p1137_p10 = scmp.ne.s32.totalorder %s76_s9, %s1136_s17  ;;  %p1142_p12 = scmp.lt.s32.totalorder %s1136_s17, %s1136_s17 }
  0x56   :  { %p1143_p13 = por %p1142_p12, %p1141_p11 }
  0x58   :  { %p1144_p0 = pnand %p1143_p13, %p1137_p10 }
  0x5a   :  { %1147 = shalt.err (!%p1144_p0)
}
  0x5b   :  { %81 = dma.hbm_to_vmem [thread:$0]  %s1934_s5, 1024, %s76_s9, [#allocation11], %s1181_s7, %s1181_s7, %s1182_s8  }
  0x5c   :  { %1170 = dma.done.wait [#allocation5], 16  }
  0x5d   :  { %1171 = vsyncadd [#allocation5], 4294967280 }
  0x5e   :  { %1172 = dma.done.wait [#allocation3], 192  }
  0x5f   :  { %1173 = vsyncadd [#allocation3], 4294967104 }
  0x60   :  { %1174 = dma.done.wait [#allocation8], 2048  }
  0x61   :  { %1175 = vsyncadd [#allocation8], 4294965248 }
  0x62   :  { %1176 = dma.done.wait [#allocation11], 2048  }
  0x63   :  { %1177 = vsyncadd [#allocation11], 4294965248 }
  0x64   :  { %100 = sfence }
  0x65   :  { %v204_v0 = vld [vmem:[#allocation9] sm:$0xff]  ;;  %v1188_v2 = vmov 0   ;;  %v205_v3 = vld [vmem:[#allocation9 + $0x8] sm:$0xff]  ;;  %v206_v5 = vld [vmem:[#allocation9 + $0x10] sm:$0xff]  ;;  %v1936_v33 = vlaneseq  ;;  %s1360_s5 = sld [smem:[#allocation2]]  ;;  %s911_s7 = sld [smem:[#allocation2 + $0x2]] }
  0x66   :  { %v103_v1 = vld [vmem:[#allocation7] sm:$0xff]  ;;  %925 = vset.pattern.permute.xlu1 %v1188_v2  ;;  %924 = vset.pattern.permute.xlu0 %v1188_v2  ;;  %v104_v4 = vld [vmem:[#allocation7 + $0x8] sm:$0xff]  ;;  %v105_v6 = vld [vmem:[#allocation7 + $0x10] sm:$0xff]  ;;  %s912_s8 = sld [smem:[#allocation2 + $0x1]]  ;;  %s1190_s18 = smov [#allocation13]  }
  0x67   :  { %214 = vperm.xlu1 %925, %v204_v0   ;;  %113 = vperm.xlu0 %924, %v103_v1   ;;  %v207_v7 = vld [vmem:[#allocation9 + $0x18] sm:$0xff]  ;;  %v328_v9 = vld [vmem:[#allocation10 + $0x8] sm:$0xff]  ;;  %v327_v10 = vld [vmem:[#allocation10] sm:$0xff]  ;;  %v1311_v36 = vshrl.u32 %v1936_v33, 7  ;;  %s899_s19 = sshll.u32 %s1190_s18, 4  ;;  %s900_s19 = int_to_ptr.vmem [resolvable:$true] %s899_s19 }
  0x68   :  { %v106_v8 = vld [vmem:[#allocation7 + $0x18] sm:$0xff]  ;;  %v208_v11 = vld [vmem:[#allocation9 + $0x20] sm:$0xff]  ;;  %v108_v13 = vld [vmem:[#allocation7 + $0x28] sm:$0xff]  ;;  %s1148_s0 = scalar_lea.vmem %s900_s19, 48  ;;  %s1152_s20 = scalar_lea.vmem %s900_s19, 64 }
  0x69   :  { %v107_v12 = vld [vmem:[#allocation7 + $0x20] sm:$0xff]  ;;  %v329_v14 = vld [vmem:[#allocation10 + $0x10] sm:$0xff]  ;;  %v330_v15 = vld [vmem:[#allocation10 + $0x18] sm:$0xff]  ;;  %1959 = vst [vmem:[#allocation19_spill] sm:$0xff] %v1311_v36  ;;  %v254_v39 = vsub.s32 2, %v1311_v36  ;;  %v155_v40 = vsub.s32 1, %v1311_v36  ;;  %p1149_p1 = scmp.ne.s32.totalorder %s900_s19, %s1148_s0  ;;  %p1153_p2 = scmp.lt.s32.totalorder %s900_s19, %s900_s19 }
  0x6a   :  { %v209_v16 = vld [vmem:[#allocation9 + $0x28] sm:$0xff]  ;;  %v210_v17 = vld [vmem:[#allocation9 + $0x30] sm:$0xff]  ;;  %v110_v19 = vld [vmem:[#allocation7 + $0x38] sm:$0xff]  ;;  %v258_v42 = vsub.s32 6, %v1311_v36  ;;  %v159_v43 = vsub.s32 5, %v1311_v36  ;;  %p1154_p3 = scmp.lt.s32.totalorder %s1152_s20, %s1148_s0 }
  0x6b   :  { %219 = vperm.xlu1 %925, %v205_v3   ;;  %118 = vperm.xlu0 %924, %v104_v4   ;;  %v109_v18 = vld [vmem:[#allocation7 + $0x30] sm:$0xff]  ;;  %v331_v20 = vld [vmem:[#allocation10 + $0x20] sm:$0xff]  ;;  %v332_v21 = vld [vmem:[#allocation10 + $0x28] sm:$0xff] }
  0x6c   :  { %v211_v22 = vld [vmem:[#allocation9 + $0x38] sm:$0xff]  ;;  %v333_v24 = vld [vmem:[#allocation10 + $0x30] sm:$0xff]  ;;  %v712_v25 = vld [vmem:[#allocation12 + $0x8] sm:$0xff]  ;;  %p1155_p4 = por %p1154_p3, %p1153_p2 }
  0x6d   :  { %v334_v23 = vld [vmem:[#allocation10 + $0x38] sm:$0xff]  ;;  %v711_v26 = vld [vmem:[#allocation12] sm:$0xff]  ;;  %v713_v28 = vld [vmem:[#allocation12 + $0x10] sm:$0xff] }
  0x6e   :  { %v714_v27 = vld [vmem:[#allocation12 + $0x18] sm:$0xff]  ;;  %v716_v29 = vld [vmem:[#allocation12 + $0x28] sm:$0xff]  ;;  %v715_v30 = vld [vmem:[#allocation12 + $0x20] sm:$0xff]  ;;  %p1156_p5 = pnand %p1155_p4, %p1149_p1 }
  0x6f   :  { %224 = vperm.xlu1 %925, %v206_v5   ;;  %123 = vperm.xlu0 %924, %v105_v6   ;;  %v718_v31 = vld [vmem:[#allocation12 + $0x38] sm:$0xff]  ;;  %v717_v32 = vld [vmem:[#allocation12 + $0x30] sm:$0xff] }
  0x70   :  { %v1315_v41 = vld [vmem:[#allocation6] sm:$0x77]  ;;  %v1319_v46 = vld [vmem:[#allocation6 + $0x8] sm:$0x7] }
  0x71   :  { %v255_v47 = vrot.slane %v1315_v41, %v254_v39  ;;  %v156_v48 = vrot.slane %v1315_v41, %v155_v40  ;;  %v259_v49 = vrot.slane %v1315_v41, %v258_v42  ;;  %v160_v50 = vrot.slane %v1315_v41, %v159_v43 }
  0x72   :  { %v263_v53 = vrot.slane %v1319_v46, %v254_v39  ;;  %v164_v56 = vrot.slane %v1319_v46, %v155_v40 }
  0x73   :  { %229 = vperm.xlu1 %925, %v207_v7   ;;  %128 = vperm.xlu0 %924, %v106_v8   ;;  %v1326_v54 = vrot.slane %v255_v47, %v254_v39  ;;  %v1328_v55 = vrot.slane %v156_v48, %v155_v40  ;;  %v1331_v57 = vrot.slane %v259_v49, %v254_v39 }
  0x74   :  { %v1333_v58 = vrot.slane %v160_v50, %v155_v40  ;;  %v1337_v63 = vrot.slane %v263_v53, %v254_v39  ;;  %v1341_v2 = vrot.slane %v164_v56, %v155_v40  ;;  %v828_v49 = vmul.f32 %v1315_v41, %v1315_v41 }
  0x75   :  { %v1387_v50 = vmul.f32 %v1319_v46, %v1319_v46  ;;  %v830_v53 = vstv %s1360_s5 }
  0x77   :  { %342 = vperm.xlu1 %925, %v328_v9   ;;  %337 = vperm.xlu0 %924, %v327_v10  }
  0x7b   :  { %234 = vperm.xlu1 %925, %v208_v11   ;;  %133 = vperm.xlu0 %924, %v107_v12  }
  0x7f   :  { %138 = vperm.xlu1 %925, %v108_v13   ;;  %347 = vperm.xlu0 %924, %v329_v14  }
  0x83   :  { %352 = vperm.xlu1 %925, %v330_v15   ;;  %239 = vperm.xlu0 %924, %v209_v16  }
  0x87   :  { %244 = vperm.xlu1 %925, %v210_v17   ;;  %143 = vperm.xlu0 %924, %v109_v18  }
  0x8b   :  { %148 = vperm.xlu1 %925, %v110_v19   ;;  %357 = vperm.xlu0 %924, %v331_v20  }
  0x8f   :  { %362 = vperm.xlu1 %925, %v332_v21   ;;  %249 = vperm.xlu0 %924, %v211_v22  }
  0x93   :  { %372 = vperm.xlu1 %925, %v334_v23   ;;  %367 = vperm.xlu0 %924, %v333_v24  }
  0x97   :  { %726 = vperm.xlu1 %925, %v712_v25   ;;  %721 = vperm.xlu0 %924, %v711_v26  }
  0x9b   :  { %736 = vperm.xlu1 %925, %v714_v27   ;;  %731 = vperm.xlu0 %924, %v713_v28  }
  0x9f   :  { %746 = vperm.xlu1 %925, %v716_v29   ;;  %741 = vperm.xlu0 %924, %v715_v30  }
  0xa3   :  { %756 = vperm.xlu1 %925, %v718_v31   ;;  %751 = vperm.xlu0 %924, %v717_v32  }
  0xe6   :  { %v215_v34 = vpop.permute.xlu1 %214  ;;  %v114_v35 = vpop.permute.xlu0 %113 }
  0xe7   :  { %v279_v3 = vmul.f32 %v1326_v54, %v215_v34  ;;  %v280_v7 = vmul.f32 %v1331_v57, %v215_v34  ;;  %v281_v8 = vmul.f32 %v1337_v63, %v215_v34  ;;  %v180_v9 = vmul.f32 %v1328_v55, %v114_v35 }
  0xe8   :  { %v181_v10 = vmul.f32 %v1333_v58, %v114_v35  ;;  %v182_v15 = vmul.f32 %v1341_v2, %v114_v35 }
  0xe9   :  { %v303_v27 = vadd.f32 %v279_v3, %v180_v9 }
  0xea   :  { %v220_v37 = vpop.permute.xlu1 %219  ;;  %v119_v38 = vpop.permute.xlu0 %118  ;;  %v304_v28 = vadd.f32 %v280_v7, %v181_v10  ;;  %v305_v29 = vadd.f32 %v281_v8, %v182_v15 }
  0xeb   :  { %v282_v59 = vmul.f32 %v1326_v54, %v220_v37  ;;  %v183_v60 = vmul.f32 %v1328_v55, %v119_v38  ;;  %v283_v0 = vmul.f32 %v1331_v57, %v220_v37  ;;  %v184_v1 = vmul.f32 %v1333_v58, %v119_v38 }
  0xec   :  { %v284_v11 = vmul.f32 %v1337_v63, %v220_v37  ;;  %v185_v12 = vmul.f32 %v1341_v2, %v119_v38 }
  0xed   :  { %v306_v4 = vadd.f32 %v282_v59, %v183_v60  ;;  %v307_v13 = vadd.f32 %v283_v0, %v184_v1 }
  0xee   :  { %v225_v44 = vpop.permute.xlu1 %224  ;;  %v124_v45 = vpop.permute.xlu0 %123  ;;  %v308_v25 = vadd.f32 %v284_v11, %v185_v12 }
  0xef   :  { %v285_v16 = vmul.f32 %v1326_v54, %v225_v44  ;;  %v286_v17 = vmul.f32 %v1331_v57, %v225_v44  ;;  %v186_v18 = vmul.f32 %v1328_v55, %v124_v45  ;;  %v287_v19 = vmul.f32 %v1337_v63, %v225_v44 }
  0xf0   :  { %v187_v20 = vmul.f32 %v1333_v58, %v124_v45  ;;  %v188_v21 = vmul.f32 %v1341_v2, %v124_v45 }
  0xf1   :  { %v309_v30 = vadd.f32 %v285_v16, %v186_v18 }
  0xf2   :  { %v230_v51 = vpop.permute.xlu1 %229  ;;  %v129_v52 = vpop.permute.xlu0 %128  ;;  %v310_v34 = vadd.f32 %v286_v17, %v187_v20  ;;  %v311_v35 = vadd.f32 %v287_v19, %v188_v21  ;;  %v1424_v19 = vadd.f32 %v830_v53, %v828_v49 }
  0xf3   :  { %v288_v39 = vmul.f32 %v1326_v54, %v230_v51  ;;  %v289_v40 = vmul.f32 %v1331_v57, %v230_v51  ;;  %v290_v42 = vmul.f32 %v1337_v63, %v230_v51  ;;  %v189_v44 = vmul.f32 %v1328_v55, %v129_v52 }
  0xf4   :  { %v190_v45 = vmul.f32 %v1333_v58, %v129_v52  ;;  %v191_v47 = vmul.f32 %v1341_v2, %v129_v52  ;;  %v1937_v52 = vsub.s32 0, %v1311_v36  ;;  %1960 = vst [vmem:[#allocation20_spill] sm:$0xff] %v1424_v19 }
  0xf6   :  { %v343_v61 = vpop.permute.xlu1 %342  ;;  %v338_v62 = vpop.permute.xlu0 %337  ;;  %v313_v3 = vadd.f32 %v289_v40, %v190_v45 }
  0xf7   :  { %v1354_v14 = vadd.f32 %v343_v61, %v306_v4  ;;  %v1365_v22 = vadd.f32 %v343_v61, %v307_v13  ;;  %v1370_v31 = vadd.f32 %v343_v61, %v308_v25  ;;  %v1376_v43 = vadd.f32 %v338_v62, %v303_v27 }
  0xf8   :  { %v1381_v48 = vadd.f32 %v338_v62, %v304_v28  ;;  %v1391_v56 = vadd.f32 %v338_v62, %v305_v29  ;;  %v312_v62 = vadd.f32 %v288_v39, %v189_v44  ;;  %v314_v4 = vadd.f32 %v290_v42, %v191_v47 }
  0xf9   :  { %v429_v26 = vmul.f32 1.442695, %v1354_v14  ;;  %v431_v32 = vmul.f32 1.442695, %v1365_v22  ;;  %v433_v51 = vmul.f32 1.442695, %v1370_v31 }
  0xfa   :  { %v1344_v5 = vpop.permute.xlu1 %234  ;;  %v1346_v6 = vpop.permute.xlu0 %133  ;;  %v423_v61 = vmul.f32 1.442695, %v1376_v43  ;;  %v425_v7 = vmul.f32 1.442695, %v1381_v48  ;;  %v427_v11 = vmul.f32 1.442695, %v1391_v56 }
  0xfb   :  { %926 = vpow2.f32 %v429_v26  ;;  %v291_v41 = vmul.f32 %v1326_v54, %v1344_v5  ;;  %v192_v46 = vmul.f32 %v1328_v55, %v1346_v6  ;;  %v292_v8 = vmul.f32 %v1331_v57, %v1344_v5 }
  0xfc   :  { %928 = vpow2.f32 %v431_v32  ;;  %v193_v9 = vmul.f32 %v1333_v58, %v1346_v6  ;;  %v293_v12 = vmul.f32 %v1337_v63, %v1344_v5  ;;  %v194_v13 = vmul.f32 %v1341_v2, %v1346_v6 }
  0xfd   :  { %930 = vpow2.f32 %v433_v51  ;;  %v315_v18 = vadd.f32 %v291_v41, %v192_v46  ;;  %vm402_vm0 = vcmp.gt.f32.partialorder %v1354_v14, 20.0  ;;  %vm403_vm3 = vcmp.gt.f32.partialorder %v1365_v22, 20.0 }
  0xfe   :  { %v1367_v23 = vpop.permute.xlu1 %138  ;;  %v348_v24 = vpop.permute.xlu0 %347  ;;  %932 = vpow2.f32 %v423_v61  ;;  %v316_v26 = vadd.f32 %v292_v8, %v193_v9  ;;  %vm404_vm6 = vcmp.gt.f32.partialorder %v1370_v31, 20.0  ;;  %vm399_vm7 = vcmp.gt.f32.partialorder %v1376_v43, 20.0 }
  0xff   :  { %v1403_v0 = vadd.f32 %v348_v24, %v309_v30  ;;  %v1405_v1 = vadd.f32 %v348_v24, %v310_v34  ;;  %v1412_v10 = vadd.f32 %v348_v24, %v311_v35  ;;  %934 = vpow2.f32 %v425_v7 }
 0x100   :  { %936 = vpow2.f32 %v427_v11  ;;  %v195_v28 = vmul.f32 %v1328_v55, %v1367_v23  ;;  %v317_v30 = vadd.f32 %v293_v12, %v194_v13  ;;  %v196_v34 = vmul.f32 %v1333_v58, %v1367_v23 }
 0x101   :  { %v435_v17 = vmul.f32 1.442695, %v1403_v0  ;;  %v437_v20 = vmul.f32 1.442695, %v1405_v1  ;;  %v439_v6 = vmul.f32 1.442695, %v1412_v10  ;;  %v197_v35 = vmul.f32 %v1341_v2, %v1367_v23 }
 0x102   :  { %v353_v37 = vpop.permute.xlu1 %352  ;;  %v240_v38 = vpop.permute.xlu0 %239  ;;  %vm400_vm8 = vcmp.gt.f32.partialorder %v1381_v48, 20.0  ;;  %vm401_vm10 = vcmp.gt.f32.partialorder %v1391_v56, 20.0 }
 0x103   :  { %v1427_v21 = vadd.f32 %v353_v37, %v312_v62  ;;  %v1429_v24 = vadd.f32 %v353_v37, %v313_v3  ;;  %v1431_v5 = vadd.f32 %v353_v37, %v314_v4  ;;  %v294_v25 = vmul.f32 %v1326_v54, %v240_v38 }
 0x104   :  { %v295_v29 = vmul.f32 %v1331_v57, %v240_v38  ;;  %938 = vpow2.f32 %v435_v17  ;;  %v296_v37 = vmul.f32 %v1337_v63, %v240_v38 }
 0x105   :  { %v1435_v27 = vpop.eup %926  ;;  %940 = vpow2.f32 %v437_v20  ;;  %v441_v40 = vmul.f32 1.442695, %v1427_v21  ;;  %v443_v42 = vmul.f32 1.442695, %v1429_v24  ;;  %v445_v44 = vmul.f32 1.442695, %v1431_v5 }
 0x106   :  { %v1393_v59 = vpop.permute.xlu1 %244  ;;  %v1395_v60 = vpop.permute.xlu0 %143  ;;  %942 = vpow2.f32 %v439_v6  ;;  %v318_v47 = vadd.f32 %v294_v25, %v195_v28  ;;  %v498_v51 = vadd.f32 1.0, %v1435_v27  ;;  %v319_v41 = vadd.f32 %v295_v29, %v196_v34 }
 0x107   :  { %v1445_v39 = vpop.eup %928  ;;  %v297_v23 = vmul.f32 %v1326_v54, %v1393_v59  ;;  %v198_v38 = vmul.f32 %v1328_v55, %v1395_v60  ;;  %v320_v3 = vadd.f32 %v296_v37, %v197_v35  ;;  %944 = vpow2.f32 %v441_v40 }
 0x108   :  { %v507_v4 = vadd.f32 1.0, %v1445_v39  ;;  %v1463_v7 = vpop.eup %930  ;;  %v299_v8 = vmul.f32 %v1337_v63, %v1393_v59  ;;  %946 = vlog2.f32 %v498_v51  ;;  %vm408_vm15 = vcmp.gt.f32.partialorder %v1427_v21, 20.0 }
 0x109   :  { %v1471_v11 = vpop.eup %932 }
 0x10a   :  { %v1419_v15 = vpop.permute.xlu1 %148  ;;  %v358_v16 = vpop.permute.xlu0 %357  ;;  %948 = vlog2.f32 %v507_v4 }
 0x10b   :  { %v1456_v61 = vadd.f32 %v358_v16, %v315_v18  ;;  %v201_v46 = vmul.f32 %v1328_v55, %v1419_v15  ;;  %v1460_v62 = vadd.f32 %v358_v16, %v316_v26  ;;  %v1469_v9 = vadd.f32 %v358_v16, %v317_v30 }
 0x10c   :  { %v321_v26 = vadd.f32 %v297_v23, %v198_v38  ;;  %v202_v16 = vmul.f32 %v1333_v58, %v1419_v15  ;;  %950 = vpow2.f32 %v443_v42  ;;  %v203_v30 = vmul.f32 %v1341_v2, %v1419_v15 }
 0x10d   :  { %1961 = vst [vmem:[#allocation21_spill] sm:$0xff] %v1460_v62  ;;  %1962 = vst [vmem:[#allocation22_spill] sm:$0xff] %v1469_v9  ;;  %v447_v18 = vmul.f32 1.442695, %v1456_v61  ;;  %v449_v28 = vmul.f32 1.442695, %v1460_v62  ;;  %952 = vpow2.f32 %v445_v44  ;;  %v199_v42 = vmul.f32 %v1333_v58, %v1395_v60 }
 0x10e   :  { %v250_v32 = vpop.permute.xlu0 %249  ;;  %v363_v45 = vpop.permute.xlu1 %362  ;;  %v200_v44 = vmul.f32 %v1341_v2, %v1395_v60  ;;  %v501_v23 = vmul.f32 -0.5, %v1435_v27  ;;  %v1514_v58 = vadd.f32 %v830_v53, %v1387_v50  ;;  %v510_v2 = vmul.f32 -0.5, %v1445_v39 }
 0x10f   :  { %v300_v49 = vmul.f32 %v1326_v54, %v250_v32  ;;  %v298_v54 = vmul.f32 %v1331_v57, %v1393_v59  ;;  %v1473_v12 = vadd.f32 %v363_v45, %v318_v47  ;;  %v301_v55 = vmul.f32 %v1331_v57, %v250_v32  ;;  %v1480_v59 = vpop.eup %934 }
 0x110   :  { %v1477_v20 = vadd.f32 %v363_v45, %v319_v41  ;;  %v302_v6 = vmul.f32 %v1337_v63, %v250_v32  ;;  %v1485_v29 = vadd.f32 %v363_v45, %v320_v3  ;;  %v1487_v57 = vpop.eup %936  ;;  %v451_v63 = vmul.f32 1.442695, %v1469_v9  ;;  %1965 = vst [vmem:[#allocation25_spill] sm:$0xff] %v1514_v58 }
 0x111   :  { %v324_v13 = vadd.f32 %v300_v49, %v201_v46  ;;  %v1494_v34 = vpop.eup %938  ;;  %v453_v35 = vmul.f32 1.442695, %v1473_v12  ;;  %v325_v37 = vadd.f32 %v301_v55, %v202_v16  ;;  %954 = vpow2.f32 %v447_v18 }
 0x112   :  { %v368_v17 = vpop.permute.xlu0 %367  ;;  %v373_v25 = vpop.permute.xlu1 %372  ;;  %v455_v15 = vmul.f32 1.442695, %v1477_v20  ;;  %v326_v47 = vadd.f32 %v302_v6, %v203_v30  ;;  %956 = vpow2.f32 %v449_v28  ;;  %v457_v51 = vmul.f32 1.442695, %v1485_v29 }
 0x113   :  { %v1492_v32 = vadd.f32 %v368_v17, %v321_v26  ;;  %v1497_v40 = vadd.f32 %v373_v25, %v324_v13  ;;  %v1499_v45 = vpop.eup %940  ;;  %958 = vpow2.f32 %v451_v63  ;;  %v1517_v46 = vadd.f32 %v373_v25, %v325_v37 }
 0x114   :  { %v1504_v49 = vpop.eup %942  ;;  %960 = vpow2.f32 %v453_v35  ;;  %v1523_v4 = vadd.f32 %v373_v25, %v326_v47  ;;  %v322_v55 = vadd.f32 %v298_v54, %v199_v42  ;;  %v516_v13 = vadd.f32 1.0, %v1463_v7 }
 0x115   :  { %1963 = vst [vmem:[#allocation23_spill] sm:$0xff] %v1492_v32  ;;  %1964 = vst [vmem:[#allocation24_spill] sm:$0xff] %v1497_v40  ;;  %v459_v38 = vmul.f32 1.442695, %v1492_v32  ;;  %v465_v3 = vmul.f32 1.442695, %v1497_v40  ;;  %v1521_v60 = vpop.eup %944  ;;  %962 = vpow2.f32 %v455_v15  ;;  %v323_v50 = vadd.f32 %v299_v8, %v200_v44 }
 0x116   :  { %1966 = vst [vmem:[#allocation26_spill] sm:$0xff] %v1517_v46  ;;  %1967 = vst [vmem:[#allocation27_spill] sm:$0xff] %v1523_v4  ;;  %v947_v18 = vpop.eup %946  ;;  %964 = vpow2.f32 %v457_v51  ;;  %v502_v53 = vadd.f32 1.0, %v501_v23  ;;  %v471_v6 = vadd.f32 1.0, %v1471_v11  ;;  %v1527_v26 = vadd.f32 %v368_v17, %v322_v55 }
 0x117   :  { %966 = vpow2.f32 %v459_v38  ;;  %v504_v16 = vand.u32 2147483647, %v1435_v27  ;;  %v480_v28 = vadd.f32 1.0, %v1480_v59  ;;  %v949_v30 = vpop.eup %948  ;;  %v467_v25 = vmul.f32 1.442695, %v1517_v46 }
 0x118   :  { %1968 = vst [vmem:[#allocation28_spill] sm:$0xff] %v1527_v26  ;;  %968 = vpow2.f32 %v465_v3  ;;  %v1532_v54 = vadd.f32 %v368_v17, %v323_v50  ;;  %v511_v63 = vadd.f32 1.0, %v510_v2  ;;  %v1534_v35 = vpop.eup %950  ;;  %v469_v8 = vmul.f32 1.442695, %v1523_v4 }
 0x119   :  { %v500_v37 = vmul.f32 0.6931472, %v947_v18  ;;  %v513_v42 = vand.u32 2147483647, %v1445_v39  ;;  %970 = vlog2.f32 %v516_v13  ;;  %v1538_v15 = vpop.eup %952  ;;  %v503_v47 = vmul.f32 %v1435_v27, %v502_v53 }
 0x11a   :  { %1969 = vst [vmem:[#allocation29_spill] sm:$0xff] %v1532_v54  ;;  %972 = vlog2.f32 %v471_v6  ;;  %v489_v44 = vadd.f32 1.0, %v1487_v57  ;;  %v461_v51 = vmul.f32 1.442695, %v1527_v26  ;;  %v509_v23 = vmul.f32 0.6931472, %v949_v30 }
 0x11b   :  { %v1543_v17 = vpop.eup %954  ;;  %v519_v38 = vmul.f32 -0.5, %v1463_v7  ;;  %974 = vlog2.f32 %v480_v28  ;;  %v463_v2 = vmul.f32 1.442695, %v1532_v54  ;;  %vm1550_vm1 = vcmp.lt.f32.partialorder %v504_v16, 0.0004427343 }
 0x11c   :  { %v1547_v3 = vpop.eup %956  ;;  %976 = vpow2.f32 %v467_v25  ;;  %v512_v27 = vmul.f32 %v1445_v39, %v511_v63  ;;  %v506_v18 = vsel %vm1550_vm1, %v503_v47, %v500_v37  ;;  %vm1559_vm2 = vcmp.lt.f32.partialorder %v513_v42, 0.0004427343  ;;  %v1576_v42 = vpop.permute.xlu1 %726 }
 0x11d   :  { %v1555_v13 = vpop.eup %958  ;;  %978 = vpow2.f32 %v469_v8  ;;  %v552_v53 = vadd.f32 1.0, %v1521_v60  ;;  %v522_v16 = vand.u32 2147483647, %v1463_v7  ;;  %v474_v28 = vmul.f32 -0.5, %v1471_v11 }
 0x11e   :  { %v1564_v6 = vpop.eup %960  ;;  %980 = vlog2.f32 %v489_v44  ;;  %v561_v39 = vadd.f32 1.0, %v1534_v35  ;;  %v515_v25 = vsel %vm1559_vm2, %v512_v27, %v509_v23  ;;  %v520_v63 = vadd.f32 1.0, %v519_v38 }
 0x11f   :  { %v1569_v30 = vpop.eup %962  ;;  %982 = vpow2.f32 %v461_v51  ;;  %v570_v8 = vadd.f32 1.0, %v1538_v15  ;;  %v690_v47 = vsel %vm402_vm0, %v1354_v14, %v506_v18  ;;  %v477_v44 = vand.u32 2147483647, %v1471_v11 }
 0x120   :  { %v1574_v37 = vpop.eup %964  ;;  %984 = vpow2.f32 %v463_v2  ;;  %v525_v55 = vadd.f32 1.0, %v1494_v34  ;;  %v534_v23 = vadd.f32 1.0, %v1499_v45  ;;  %v1590_v38 = vrot.slane %v1424_v19, %v1937_v52 }
 0x121   :  { %v1583_v51 = vpop.eup %966  ;;  %986 = vlog2.f32 %v552_v53  ;;  %vm1594_vm4 = vcmp.lt.f32.partialorder %v522_v16, 0.0004427343  ;;  %v691_v27 = vsel %vm403_vm3, %v1365_v22, %v515_v25  ;;  %v483_v18 = vmul.f32 -0.5, %v1480_v59 }
 0x122   :  { %1974 = vst [vmem:[#allocation30_spill] sm:$0xff] %v1583_v51  ;;  %1975 = vst [vmem:[#allocation31_spill] sm:$0xff] %v1590_v38  ;;  %v1592_v2 = vpop.eup %968  ;;  %v486_v50 = vand.u32 2147483647, %v1480_v59  ;;  %988 = vlog2.f32 %v561_v39  ;;  %v521_v33 = vmul.f32 %v1463_v7, %v520_v63  ;;  %v1603_v41 = vmul.f32 %v1576_v42, %v690_v47 }
 0x123   :  { %v971_v53 = vpop.eup %970  ;;  %v475_v52 = vadd.f32 1.0, %v474_v28  ;;  %990 = vlog2.f32 %v570_v8  ;;  %vm1605_vm5 = vcmp.lt.f32.partialorder %v477_v44, 0.0004427343  ;;  %v492_v22 = vmul.f32 -0.5, %v1487_v57 }
 0x124   :  { %v973_v58 = vpop.eup %972  ;;  %v555_v25 = vmul.f32 -0.5, %v1521_v60  ;;  %992 = vlog2.f32 %v525_v55  ;;  %v564_v7 = vmul.f32 -0.5, %v1534_v35  ;;  %v573_v28 = vmul.f32 -0.5, %v1538_v15 }
 0x125   :  { %v975_v38 = vpop.eup %974  ;;  %994 = vlog2.f32 %v534_v23  ;;  %v543_v39 = vadd.f32 1.0, %v1504_v49  ;;  %v1619_v8 = vmul.f32 %v1576_v42, %v691_v27  ;;  %v484_v47 = vadd.f32 1.0, %v483_v18 }
 0x126   :  { %v1616_v63 = vpop.eup %976  ;;  %vm1622_vm9 = vcmp.lt.f32.partialorder %v486_v50, 0.0004427343  ;;  %v495_v55 = vand.u32 2147483647, %v1487_v57  ;;  %v518_v36 = vmul.f32 0.6931472, %v971_v53  ;;  %v476_v54 = vmul.f32 %v1471_v11, %v475_v52 }
 0x127   :  { %v1627_v19 = vpop.eup %978  ;;  %v473_v23 = vmul.f32 0.6931472, %v973_v58  ;;  %v558_v4 = vand.u32 2147483647, %v1521_v60  ;;  %v482_v27 = vmul.f32 0.6931472, %v975_v38  ;;  %996 = vlog2.f32 %v543_v39 }
 0x128   :  { %v981_v26 = vpop.eup %980  ;;  %v493_v32 = vadd.f32 1.0, %v492_v22  ;;  %v556_v46 = vadd.f32 1.0, %v555_v25  ;;  %v567_v18 = vand.u32 2147483647, %v1534_v35  ;;  %v565_v40 = vadd.f32 1.0, %v564_v7 }
 0x129   :  { %v1632_v50 = vpop.eup %982  ;;  %v574_v51 = vadd.f32 1.0, %v573_v28  ;;  %v576_v9 = vand.u32 2147483647, %v1538_v15  ;;  %v485_v52 = vmul.f32 %v1480_v59, %v484_v47  ;;  %vm1639_vm11 = vcmp.lt.f32.partialorder %v495_v55, 0.0004427343 }
 0x12a   :  { %v1635_v62 = vpop.eup %984  ;;  %v528_v58 = vmul.f32 -0.5, %v1494_v34  ;;  %v531_v38 = vand.u32 2147483647, %v1494_v34  ;;  %v524_v22 = vsel %vm1594_vm4, %v521_v33, %v518_v36  ;;  %v479_v25 = vsel %vm1605_vm5, %v476_v54, %v473_v23 }
 0x12b   :  { %1982 = vst [vmem:[#allocation32_spill] sm:$0xff] %v1635_v62  ;;  %v987_v53 = vpop.eup %986  ;;  %v491_v7 = vmul.f32 0.6931472, %v981_v26  ;;  %v537_v28 = vmul.f32 -0.5, %v1499_v45  ;;  %v488_v59 = vsel %vm1622_vm9, %v485_v52, %v482_v27  ;;  %v494_v47 = vmul.f32 %v1487_v57, %v493_v32 }
 0x12c   :  { %v989_v39 = vpop.eup %988  ;;  %vm1653_vm12 = vcmp.lt.f32.partialorder %v558_v4, 0.0004427343  ;;  %vm1657_vm13 = vcmp.lt.f32.partialorder %v567_v18, 0.0004427343  ;;  %v557_v36 = vmul.f32 %v1521_v60, %v556_v46  ;;  %v566_v26 = vmul.f32 %v1534_v35, %v565_v40  ;;  %v722_v60 = vpop.permute.xlu0 %721 }
 0x12d   :  { %v991_v33 = vpop.eup %990  ;;  %v575_v54 = vmul.f32 %v1538_v15, %v574_v51  ;;  %vm1664_vm14 = vcmp.lt.f32.partialorder %v576_v9, 0.0004427343  ;;  %v692_v32 = vsel %vm404_vm6, %v1370_v31, %v524_v22  ;;  %v687_v4 = vsel %vm399_vm7, %v1376_v43, %v479_v25 }
 0x12e   :  { %v993_v57 = vpop.eup %992  ;;  %vm409_vm0 = vcmp.gt.f32.partialorder %v1429_v24, 20.0  ;;  %v529_v40 = vadd.f32 1.0, %v528_v58  ;;  %vm1676_vm1 = vcmp.lt.f32.partialorder %v531_v38, 0.0004427343  ;;  %v497_v35 = vsel %vm1639_vm11, %v494_v47, %v491_v7 }
 0x12f   :  { %v995_v9 = vpop.eup %994  ;;  %v688_v31 = vsel %vm400_vm8, %v1381_v48, %v488_v59  ;;  %vm410_vm2 = vcmp.gt.f32.partialorder %v1431_v5, 20.0  ;;  %v554_v43 = vmul.f32 0.6931472, %v987_v53  ;;  %vm405_vm3 = vcmp.gt.f32.partialorder %v1403_v0, 20.0 }
 0x130   :  { %v538_v15 = vadd.f32 1.0, %v537_v28  ;;  %v563_v51 = vmul.f32 0.6931472, %v989_v39  ;;  %vm406_vm4 = vcmp.gt.f32.partialorder %v1405_v1, 20.0  ;;  %v540_v16 = vand.u32 2147483647, %v1499_v45 }
 0x131   :  { %v546_v44 = vmul.f32 -0.5, %v1504_v49  ;;  %v606_v23 = vadd.f32 1.0, %v1564_v6  ;;  %v764_v27 = vmul.f32 %v1576_v42, %v692_v32  ;;  %v572_v18 = vmul.f32 0.6931472, %v991_v33  ;;  %v997_v22 = vpop.eup %996 }
 0x132   :  { %v527_v52 = vmul.f32 0.6931472, %v993_v57  ;;  %v615_v48 = vadd.f32 1.0, %v1569_v30  ;;  %v759_v11 = vmul.f32 %v722_v60, %v687_v4  ;;  %v530_v58 = vmul.f32 %v1494_v34, %v529_v40  ;;  %v732_v40 = vpop.permute.xlu0 %731 }
 0x133   :  { %v536_v38 = vmul.f32 0.6931472, %v995_v9  ;;  %v624_v53 = vadd.f32 1.0, %v1574_v37  ;;  %v689_v25 = vsel %vm401_vm10, %v1391_v56, %v497_v35  ;;  %v760_v7 = vmul.f32 %v722_v60, %v688_v31 }
 0x134   :  { %v560_v28 = vsel %vm1653_vm12, %v557_v36, %v554_v43  ;;  %v539_v42 = vmul.f32 %v1499_v45, %v538_v15  ;;  %v569_v39 = vsel %vm1657_vm13, %v566_v26, %v563_v51  ;;  %vm407_vm5 = vcmp.gt.f32.partialorder %v1412_v10, 20.0 }
 0x135   :  { %v547_v34 = vadd.f32 1.0, %v546_v44  ;;  %v549_v59 = vand.u32 2147483647, %v1504_v49  ;;  %998 = vlog2.f32 %v606_v23  ;;  %v578_v47 = vsel %vm1664_vm14, %v575_v54, %v572_v18 }
 0x136   :  { %v533_v56 = vsel %vm1676_vm1, %v530_v58, %v527_v52  ;;  %vm541_vm6 = vcmp.lt.f32.partialorder %v540_v16, 0.0004427343  ;;  %1000 = vlog2.f32 %v615_v48  ;;  %v545_v33 = vmul.f32 0.6931472, %v997_v22 }
 0x137   :  { %v542_v55 = vsel %vm541_vm6, %v539_v42, %v536_v38  ;;  %1002 = vlog2.f32 %v624_v53  ;;  %v579_v62 = vadd.f32 1.0, %v1543_v17  ;;  %v761_v45 = vmul.f32 %v722_v60, %v689_v25  ;;  %v737_v60 = vpop.permute.xlu1 %736 }
 0x138   :  { %v783_v36 = vadd.f32 %v1603_v41, %v759_v11  ;;  %v696_v26 = vsel %vm408_vm15, %v1427_v21, %v560_v28  ;;  %v697_v54 = vsel %vm409_vm0, %v1429_v24, %v569_v39  ;;  %v698_v14 = vsel %vm410_vm2, %v1431_v5, %v578_v47 }
 0x139   :  { %v548_v57 = vmul.f32 %v1504_v49, %v547_v34  ;;  %vm1721_vm7 = vcmp.lt.f32.partialorder %v549_v59, 0.0004427343  ;;  %v693_v41 = vsel %vm405_vm3, %v1403_v0, %v533_v56  ;;  %v694_v21 = vsel %vm406_vm4, %v1405_v1, %v542_v55 }
 0x13a   :  { %v609_v24 = vmul.f32 -0.5, %v1564_v6  ;;  %v612_v4 = vand.u32 2147483647, %v1564_v6  ;;  %v588_v5 = vadd.f32 1.0, %v1547_v3  ;;  %v796_v49 = vadd.f32 %v1619_v8, %v760_v7 }
 0x13b   :  { %v551_v46 = vsel %vm1721_vm7, %v548_v57, %v545_v33  ;;  %1004 = vlog2.f32 %v579_v62  ;;  %v597_v9 = vadd.f32 1.0, %v1555_v13  ;;  %v809_v0 = vadd.f32 %v764_v27, %v761_v45 }
 0x13c   :  { %v765_v35 = vmul.f32 %v732_v40, %v693_v41  ;;  %v618_v1 = vmul.f32 -0.5, %v1569_v30  ;;  %v627_v31 = vmul.f32 -0.5, %v1574_v37  ;;  %v768_v43 = vmul.f32 %v737_v60, %v696_v26 }
 0x13d   :  { %v769_v15 = vmul.f32 %v737_v60, %v697_v54  ;;  %v1740_v51 = vmul.f32 %v737_v60, %v698_v14  ;;  %v766_v16 = vmul.f32 %v732_v40, %v694_v21  ;;  %v695_v8 = vsel %vm407_vm5, %v1412_v10, %v551_v46 }
 0x13e   :  { %v610_v44 = vadd.f32 1.0, %v609_v24  ;;  %vm1745_vm8 = vcmp.lt.f32.partialorder %v612_v4, 0.0004427343  ;;  %1006 = vlog2.f32 %v588_v5  ;;  %v621_v18 = vand.u32 2147483647, %v1569_v30 }
 0x13f   :  { %v999_v27 = vpop.eup %998  ;;  %v582_v52 = vmul.f32 -0.5, %v1543_v17  ;;  %v591_v48 = vmul.f32 -0.5, %v1547_v3  ;;  %1008 = vlog2.f32 %v597_v9  ;;  %v784_v58 = vadd.f32 %v783_v36, %v765_v35 }
 0x140   :  { %v1001_v11 = vpop.eup %1000  ;;  %vm414_vm9 = vcmp.gt.f32.partialorder %v1473_v12, 20.0  ;;  %v619_v38 = vadd.f32 1.0, %v618_v1  ;;  %v628_v10 = vadd.f32 1.0, %v627_v31  ;;  %v630_v53 = vand.u32 2147483647, %v1574_v37  ;;  %v2005_v1 = vld [vmem:[#allocation21_spill] sm:$0xff] }
 0x141   :  { %v1003_v22 = vpop.eup %1002  ;;  %v767_v25 = vmul.f32 %v732_v40, %v695_v8  ;;  %v797_v7 = vadd.f32 %v796_v49, %v766_v16  ;;  %vm415_vm10 = vcmp.gt.f32.partialorder %v1477_v20, 20.0  ;;  %v585_v28 = vand.u32 2147483647, %v1543_v17  ;;  %v2009_v8 = vld [vmem:[#allocation30_spill] sm:$0xff] }
 0x142   :  { %v660_v42 = vadd.f32 1.0, %v1592_v2  ;;  %vm416_vm11 = vcmp.gt.f32.partialorder %v1485_v29, 20.0  ;;  %v608_v39 = vmul.f32 0.6931472, %v999_v27  ;;  %v611_v34 = vmul.f32 %v1564_v6, %v610_v44 }
 0x143   :  { %v594_v59 = vand.u32 2147483647, %v1547_v3  ;;  %v669_v47 = vadd.f32 1.0, %v1616_v63  ;;  %v617_v56 = vmul.f32 0.6931472, %v1001_v11  ;;  %v583_v33 = vadd.f32 1.0, %v582_v52  ;;  %v747_v52 = vpop.permute.xlu1 %746 }
 0x144   :  { %vm1761_vm12 = vcmp.lt.f32.partialorder %v621_v18, 0.0004427343  ;;  %v592_v62 = vadd.f32 1.0, %v591_v48  ;;  %v620_v45 = vmul.f32 %v1569_v30, %v619_v38  ;;  %v626_v36 = vmul.f32 0.6931472, %v1003_v22 }
 0x145   :  { %v629_v26 = vmul.f32 %v1574_v37, %v628_v10  ;;  %vm1767_vm13 = vcmp.lt.f32.partialorder %v630_v53, 0.0004427343  ;;  %v1005_v6 = vpop.eup %1004  ;;  %v810_v14 = vadd.f32 %v809_v0, %v767_v25  ;;  %v600_v57 = vmul.f32 -0.5, %v1555_v13 }
 0x146   :  { %v603_v32 = vand.u32 2147483647, %v1555_v13  ;;  %1010 = vlog2.f32 %v660_v42  ;;  %v614_v41 = vsel %vm1745_vm8, %v611_v34, %v608_v39  ;;  %vm411_vm14 = vcmp.gt.f32.partialorder %v1456_v61, 20.0  ;;  %v2010_v39 = vld [vmem:[#allocation32_spill] sm:$0xff] }
 0x147   :  { %vm1776_vm15 = vcmp.lt.f32.partialorder %v585_v28, 0.0004427343  ;;  %vm1780_vm0 = vcmp.lt.f32.partialorder %v594_v59, 0.0004427343  ;;  %1012 = vlog2.f32 %v669_v47  ;;  %v623_v21 = vsel %vm1761_vm12, %v620_v45, %v617_v56 }
 0x148   :  { %v584_v24 = vmul.f32 %v1543_v17, %v583_v33  ;;  %v593_v4 = vmul.f32 %v1547_v3, %v592_v62  ;;  %v678_v5 = vadd.f32 1.0, %v1627_v19  ;;  %v1007_v49 = vpop.eup %1006  ;;  %v632_v40 = vsel %vm1767_vm13, %v629_v26, %v626_v36  ;;  %v742_v33 = vpop.permute.xlu0 %741  ;;  %v2013_v62 = vld [vmem:[#allocation24_spill] sm:$0xff] }
 0x149   :  { %v581_v46 = vmul.f32 0.6931472, %v1005_v6  ;;  %v1791_v9 = vadd.f32 %v784_v58, %v768_v43  ;;  %v1793_v0 = vadd.f32 %v797_v7, %v769_v15  ;;  %v1009_v60 = vpop.eup %1008  ;;  %v702_v35 = vsel %vm414_vm9, %v1473_v12, %v614_v41  ;;  %v2008_v15 = vld [vmem:[#allocation22_spill] sm:$0xff] }
 0x14a   :  { %vm412_vm1 = vcmp.gt.f32.partialorder %v2005_v1, 20.0  ;;  %v601_v17 = vadd.f32 1.0, %v600_v57  ;;  %vm1799_vm2 = vcmp.lt.f32.partialorder %v603_v32, 0.0004427343  ;;  %v663_v31 = vmul.f32 -0.5, %v1592_v2  ;;  %v2016_v6 = vld [vmem:[#allocation26_spill] sm:$0xff] }
 0x14b   :  { %v703_v43 = vsel %vm415_vm10, %v1477_v20, %v623_v21  ;;  %vm413_vm3 = vcmp.gt.f32.partialorder %v2008_v15, 20.0  ;;  %v1809_v16 = vadd.f32 %v810_v14, %v1740_v51  ;;  %v666_v12 = vand.u32 2147483647, %v1592_v2  ;;  %v2017_v21 = vld [vmem:[#allocation23_spill] sm:$0xff] }
 0x14c   :  { %v633_v44 = vadd.f32 1.0, %v2009_v8  ;;  %v704_v23 = vsel %vm416_vm11, %v1485_v29, %v632_v40  ;;  %v590_v27 = vmul.f32 0.6931472, %v1007_v49  ;;  %1014 = vlog2.f32 %v678_v5 }
 0x14d   :  { %v642_v18 = vadd.f32 1.0, %v1632_v50  ;;  %v587_v20 = vsel %vm1776_vm15, %v584_v24, %v581_v46  ;;  %v599_v48 = vmul.f32 0.6931472, %v1009_v60  ;;  %v672_v51 = vmul.f32 -0.5, %v1616_v63  ;;  %v2020_v46 = vld [vmem:[#allocation28_spill] sm:$0xff] }
 0x14e   :  { %1016 = vlog2.f32 %v633_v44  ;;  %v1820_v11 = vmul.f32 %v747_v52, %v702_v35  ;;  %v664_v58 = vadd.f32 1.0, %v663_v31  ;;  %v675_v38 = vand.u32 2147483647, %v1616_v63 }
 0x14f   :  { %1018 = vlog2.f32 %v642_v18  ;;  %v1823_v10 = vmul.f32 %v747_v52, %v703_v43  ;;  %v1825_v29 = vmul.f32 %v747_v52, %v704_v23  ;;  %v602_v53 = vmul.f32 %v1555_v13, %v601_v17  ;;  %v2024_v13 = vld [vmem:[#allocation29_spill] sm:$0xff] }
 0x150   :  { %v681_v22 = vmul.f32 -0.5, %v1627_v19  ;;  %v1011_v25 = vpop.eup %1010  ;;  %v596_v7 = vsel %vm1780_vm0, %v593_v4, %v590_v27  ;;  %v699_v28 = vsel %vm411_vm14, %v1456_v61, %v587_v20  ;;  %v636_v42 = vmul.f32 -0.5, %v2009_v8 }
 0x151   :  { %v651_v34 = vadd.f32 1.0, %v2010_v39  ;;  %v1013_v59 = vpop.eup %1012  ;;  %v605_v47 = vsel %vm1799_vm2, %v602_v53, %v599_v48  ;;  %vm1838_vm4 = vcmp.lt.f32.partialorder %v666_v12, 0.0004427343  ;;  %v673_v56 = vadd.f32 1.0, %v672_v51 }
 0x152   :  { %v645_v55 = vmul.f32 -0.5, %v1632_v50  ;;  %vm420_vm5 = vcmp.gt.f32.partialorder %v2013_v62, 20.0  ;;  %v665_v61 = vmul.f32 %v1592_v2, %v664_v58  ;;  %vm1845_vm6 = vcmp.lt.f32.partialorder %v675_v38, 0.0004427343  ;;  %v752_v58 = vpop.permute.xlu0 %751 }
 0x153   :  { %v684_v36 = vand.u32 2147483647, %v1627_v19  ;;  %1020 = vlog2.f32 %v651_v34  ;;  %v700_v26 = vsel %vm412_vm1, %v2005_v1, %v596_v7  ;;  %v771_v54 = vmul.f32 %v742_v33, %v699_v28  ;;  %v757_v28 = vpop.permute.xlu1 %756 }
 0x154   :  { %vm421_vm7 = vcmp.gt.f32.partialorder %v2016_v6, 20.0  ;;  %v682_v14 = vadd.f32 1.0, %v681_v22  ;;  %v639_v57 = vand.u32 2147483647, %v2009_v8  ;;  %v701_v2 = vsel %vm413_vm3, %v2008_v15, %v605_v47 }
 0x155   :  { %v662_v32 = vmul.f32 0.6931472, %v1011_v25  ;;  %v671_v41 = vmul.f32 0.6931472, %v1013_v59  ;;  %v637_v30 = vadd.f32 1.0, %v636_v42  ;;  %v674_v37 = vmul.f32 %v1616_v63, %v673_v56  ;;  %v2021_v63 = vld [vmem:[#allocation27_spill] sm:$0xff] }
 0x156   :  { %vm417_vm8 = vcmp.gt.f32.partialorder %v2017_v21, 20.0  ;;  %v646_v24 = vadd.f32 1.0, %v645_v55  ;;  %v654_v4 = vmul.f32 -0.5, %v2010_v39  ;;  %v1015_v5 = vpop.eup %1014  ;;  %v772_v49 = vmul.f32 %v742_v33, %v700_v26  ;;  %v2025_v26 = vld [vmem:[#allocation19_spill] sm:$0xff] }
 0x157   :  { %vm1861_vm9 = vcmp.lt.f32.partialorder %v684_v36, 0.0004427343  ;;  %vm418_vm10 = vcmp.gt.f32.partialorder %v2020_v46, 20.0  ;;  %v648_v60 = vand.u32 2147483647, %v1632_v50  ;;  %v773_v1 = vmul.f32 %v742_v33, %v701_v2 }
 0x158   :  { %v1017_v35 = vpop.eup %1016  ;;  %v786_v17 = vadd.f32 %v1791_v9, %v771_v54  ;;  %vm422_vm11 = vcmp.gt.f32.partialorder %v2021_v63, 20.0  ;;  %v683_v3 = vmul.f32 %v1627_v19, %v682_v14  ;;  %vm1870_vm12 = vcmp.lt.f32.partialorder %v639_v57, 0.0004427343  ;;  %v2027_v54 = vld [vmem:[#allocation20_spill] sm:$0xff] }
 0x159   :  { %v1019_v43 = vpop.eup %1018  ;;  %v668_v15 = vsel %vm1838_vm4, %v665_v61, %v662_v32  ;;  %v677_v12 = vsel %vm1845_vm6, %v674_v37, %v671_v41  ;;  %v635_v44 = vmul.f32 0.6931472, %v1017_v35  ;;  %v638_v23 = vmul.f32 %v2009_v8, %v637_v30  ;;  %v2028_v37 = vld [vmem:[#allocation31_spill] sm:$0xff] }
 0x15a   :  { %v680_v27 = vmul.f32 0.6931472, %v1015_v5  ;;  %v644_v9 = vmul.f32 0.6931472, %v1019_v43  ;;  %v647_v18 = vmul.f32 %v1632_v50, %v646_v24  ;;  %v655_v52 = vadd.f32 1.0, %v654_v4  ;;  %v2030_v4 = vld [vmem:[#allocation25_spill] sm:$0xff] }
 0x15b   :  { %v799_v19 = vadd.f32 %v1793_v0, %v772_v49  ;;  %v641_v20 = vsel %vm1870_vm12, %v638_v23, %v635_v44  ;;  %vm649_vm13 = vcmp.lt.f32.partialorder %v648_v60, 0.0004427343  ;;  %v657_v48 = vand.u32 2147483647, %v2010_v39 }
 0x15c   :  { %v708_v51 = vsel %vm420_vm5, %v2013_v62, %v668_v15  ;;  %v650_v38 = vsel %vm649_vm13, %v647_v18, %v644_v9  ;;  %v705_v8 = vsel %vm417_vm8, %v2017_v21, %v641_v20  ;;  %v787_v50 = vadd.f32 %v786_v17, %v1820_v11 }
 0x15d   :  { %v1021_v53 = vpop.eup %1020  ;;  %v709_v0 = vsel %vm421_vm7, %v2016_v6, %v677_v12  ;;  %v706_v22 = vsel %vm418_vm10, %v2020_v46, %v650_v38  ;;  %v777_v25 = vmul.f32 %v752_v58, %v705_v8  ;;  %v800_v7 = vadd.f32 %v799_v19, %v1823_v10 }
 0x15e   :  { %v686_v42 = vsel %vm1861_vm9, %v683_v3, %v680_v27  ;;  %v653_v34 = vmul.f32 0.6931472, %v1021_v53  ;;  %v656_v59 = vmul.f32 %v2010_v39, %v655_v52  ;;  %v778_v11 = vmul.f32 %v752_v58, %v706_v22 }
 0x15f   :  { %v780_v47 = vmul.f32 %v757_v28, %v708_v51  ;;  %vm419_vm14 = vcmp.gt.f32.partialorder %v2024_v13, 20.0  ;;  %vm658_vm15 = vcmp.lt.f32.partialorder %v657_v48, 0.0004427343  ;;  %v788_v56 = vadd.f32 %v787_v50, %v777_v25 }
 0x160   :  { %v812_v55 = vadd.f32 %v1809_v16, %v773_v1  ;;  %v781_v33 = vmul.f32 %v757_v28, %v709_v0  ;;  %v659_v62 = vsel %vm658_vm15, %v656_v59, %v653_v34  ;;  %v801_v61 = vadd.f32 %v800_v7, %v778_v11 }
 0x161   :  { %v710_v10 = vsel %vm422_vm11, %v2021_v63, %v686_v42  ;;  %v707_v45 = vsel %vm419_vm14, %v2024_v13, %v659_v62  ;;  %v789_v36 = vadd.f32 %v788_v56, %v780_v47  ;;  %v2026_v39 = vsub.s32 4, %v2025_v26 }
 0x162   :  { %v779_v14 = vmul.f32 %v752_v58, %v707_v45  ;;  %v802_v57 = vadd.f32 %v801_v61, %v781_v33  ;;  %v813_v2 = vadd.f32 %v812_v55, %v1825_v29  ;;  %v782_v16 = vmul.f32 %v757_v28, %v710_v10 }
 0x163   :  { %v842_v6 = vrot.slane %v2027_v54, %v2026_v39  ;;  %v790_v32 = vrot.slane %v789_v36, 4  ;;  %1022 = vrcp.f32 %v2028_v37  ;;  %v2029_v24 = vsub.s32 0, %v2025_v26 }
 0x164   :  { %v803_v41 = vrot.slane %v802_v57, 4  ;;  %v814_v30 = vadd.f32 %v813_v2, %v779_v14  ;;  %v823_v3 = vstv %s911_s7  ;;  %v1189_v27 = vmov 1966171168  }
 0x165   :  { %v791_v21 = vadd.f32 %v790_v32, %v789_v36  ;;  %v846_v5 = vrot.slane %v2030_v4, %v2029_v24  ;;  %1024 = vrcp.f32 %v842_v6  ;;  %v866_v9 = vunpack.c.l.s4 %v1189_v27 }
 0x166   :  { %v804_v49 = vadd.f32 %v803_v41, %v802_v57  ;;  %v815_v40 = vadd.f32 %v814_v30, %v782_v16  ;;  %v857_v48 = vstv %s912_s8  ;;  %v2031_v47 = vlaneseq }
 0x167   :  { %v792_v46 = vrot.slane %v791_v21, 2  ;;  %1026 = vrcp.f32 %v846_v5  ;;  %v867_v8 = vunpack.c.0.s8 %v866_v9 }
 0x168   :  { %v805_v60 = vrot.slane %v804_v49, 2  ;;  %v816_v35 = vrot.slane %v815_v40, 4  ;;  %vm890_vm0 = vcmp.lt.s32.totalorder %v2031_v47, 384 }
 0x169   :  { %v793_v29 = vadd.f32 %v792_v46, %v791_v21  ;;  %v870_v28 = vsub.s32 %v867_v8, %v2025_v26 }
 0x16a   :  { %v806_v1 = vadd.f32 %v805_v60, %v804_v49  ;;  %v817_v17 = vadd.f32 %v816_v35, %v815_v40 }
 0x16b   :  { %v794_v63 = vrot.slane %v793_v29, 1 }
 0x16c   :  { %v807_v31 = vrot.slane %v806_v1, 1  ;;  %v818_v43 = vrot.slane %v817_v17, 2 }
 0x16d   :  { %v795_v15 = vadd.f32 %v794_v63, %v793_v29  ;;  %v1023_v12 = vpop.eup %1022 }
 0x16e   :  { %v808_v44 = vadd.f32 %v807_v31, %v806_v1  ;;  %v819_v23 = vadd.f32 %v818_v43, %v817_v17 }
 0x16f   :  { %v1025_v18 = vpop.eup %1024  ;;  %v824_v52 = vadd.f32 %v823_v3, %v795_v15 }
 0x170   :  { %v820_v19 = vrot.slane %v819_v23, 1  ;;  %v825_v20 = vadd.f32 %v823_v3, %v808_v44 }
 0x171   :  { %v851_v51 = vmul.f32 %v1023_v12, %v824_v52  ;;  %v1027_v50 = vpop.eup %1026 }
 0x172   :  { %v821_v58 = vadd.f32 %v820_v19, %v819_v23  ;;  %v853_v38 = vmul.f32 %v1025_v18, %v825_v20 }
 0x173   :  { %v858_v53 = vadd.f32 %v857_v48, %v851_v51 }
 0x174   :  { %v826_v0 = vadd.f32 %v823_v3, %v821_v58  ;;  %v859_v22 = vadd.f32 %v857_v48, %v853_v38 }
 0x176   :  { %v855_v25 = vmul.f32 %v1027_v50, %v826_v0  ;;  %v864_v7 = vcombine.low %v858_v53, %v859_v22 }
 0x178   :  { %v860_v42 = vadd.f32 %v857_v48, %v855_v25  ;;  %v871_v34 = vrot.slane %v864_v7, %v870_v28 }
 0x17a   :  { %v878_v59 = vrot.slane %v860_v42, %v870_v28 }
 0x17c   :  { %v879_v11 = vcombine.low %v871_v34, %v878_v59 }
 0x17e   :  { %v886_v13 = vrot.slane %v879_v11, %v870_v28 }
 0x180   :  { %892 = vst.msk [vmem:[#allocation13] sm:$0x7] %vm890_vm0, %v886_v13 }
 0x181   :  { %1159 = shalt.err (!%p1156_p5)
}
 0x182   :  { %s1160_s22 = scalar_lea.hbm %s1935_s6, 48 }
 0x183   :  { %p1161_p6 = scmp.ne.s32.totalorder %s1935_s6, %s1160_s22  ;;  %p1164_p7 = scmp.lt.u32.totalorder %s1160_s22, %s1935_s6 }
 0x185   :  { %p1166_p8 = pnand %p1164_p7, %p1161_p6 }
 0x187   :  { %1169 = shalt.err (!%p1166_p8)
}
 0x188   :  { %902 = dma.vmem_to_hbm [thread:$0]  %s900_s19, 48, %s1935_s6, [#allocation4]  }
 0x189   :  { %1178 = dma.done.wait [#allocation4], 48  }
 0x18a   :  { %1179 = vsyncadd [#allocation4], 4294967248 }
 0x18b   :  { %906 = vsyncpa [#allocation3], 1 }
 0x18c   :  { %907 = vsyncpa [#allocation8], 1 }
 0x18d   :  { %908 = vsyncpa [#allocation11], 1 }
 0x18e   :  { %909 = vsyncpa [#allocation4], 1 }
 0x18f   :  { %910 = vsyncpa [#allocation5], 1 }

</bundles_post_ra>
